<compile_context>
chip_gen: v7x
topology: tpu7x:2x2x1
jax: 0.10.0
libtpu: 0.0.40
codegen_flags: <defaults>
</compile_context>

<pallas_src>
import functools

import jax
import jax.numpy as jnp
from jax import lax
from jax.experimental import pallas as pl
from jax.experimental.pallas import tpu as pltpu


# ---------------------------------------------------------------------------
# Config (synthetic, small shapes)
# ---------------------------------------------------------------------------
class GPTNeoConfig:
    def __init__(self):
        self.hidden_size = 32
        self.num_heads = 4
        self.max_position_embeddings = 8
        self.window_size = 4
        self.attention_layers = ["global", "local"]
        self.attention_dropout = 0.0
        self.resid_dropout = 0.0


MASKED_BIAS = -1000000000.0  # matches torch masked_bias


# ---------------------------------------------------------------------------
# Pallas kernel: full self-attention for a block of `bblk` batch elements
# ---------------------------------------------------------------------------
def _gptneo_attn_kernel(xt_ref, wqkvt_ref, wo_ref, bo_ref, out_ref, *,
                        num_heads, attention_type, window_size, matmul_dtype):
    # xt_ref: (bblk, E, S)   transposed activations, matmul dtype (bf16)
    # wqkvt_ref: (3E, E)     [Wq^T ; Wk^T ; Wv^T], matmul dtype
    # wo_ref: (E, E)         [in, out] orientation, matmul dtype
    # bo_ref: (1, E) f32     out_proj bias
    # out_ref: (bblk, S, E)  f32 output
    bblk, E, S = xt_ref.shape
    Dh = E // num_heads

    # Additive causal / local-band mask built in-kernel: 0 where attended,
    # -1e9 where masked (no HBM mask input, add instead of select).
    row = lax.broadcasted_iota(jnp.int32, (S, S), 0)   # query index
    col = lax.broadcasted_iota(jnp.int32, (S, S), 1)   # key index
    allowed = col <= row
    if attention_type == "local":
        allowed = jnp.logical_and(allowed, col > row - window_size)
    mask_bias = jnp.where(allowed, jnp.float32(0.0), jnp.float32(MASKED_BIAS))

    wqkvt = wqkvt_ref[...]                      # (3E, E)
    wo = wo_ref[...]                            # (E, E)
    bo = bo_ref[0].astype(jnp.float32)          # (E,)

    for b in range(bblk):                       # static, fully unrolled
        xt = xt_ref[b]                          # (E, S)

        # Fused QKV projection: one matmul -> (3E, S) f32.
        # Rows: [q^T ; k^T ; v^T]; each head is an aligned 8-sublane group.
        qkvt = jnp.dot(wqkvt, xt, preferred_element_type=jnp.float32)

        out_acc = jnp.zeros((S, E), jnp.float32)
        for h in range(num_heads):              # static, fully unrolled
            lo = h * Dh
            qh = qkvt[lo:lo + Dh, :].astype(matmul_dtype)              # (Dh,S)
            kh = qkvt[E + lo:E + lo + Dh, :].astype(matmul_dtype)      # (Dh,S)
            vh = qkvt[2 * E + lo:2 * E + lo + Dh, :].astype(matmul_dtype)

            # GPT-Neo: no 1/sqrt(head_dim) scaling; scores accumulated in f32.
            scores = jnp.dot(qh.T, kh, preferred_element_type=jnp.float32)
            scores = scores + mask_bias                                # (S,S)

            # numerically stable softmax (f32), EUP approx reciprocal
            m = jnp.max(scores, axis=-1, keepdims=True)
            e = jnp.exp(scores - m)
            denom = jnp.sum(e, axis=-1, keepdims=True)
            w = e * pl.reciprocal(denom, approx=True)

            o_h = jnp.dot(w.astype(matmul_dtype), vh.T,
                          preferred_element_type=jnp.float32)          # (S,Dh)

            # Fold out_proj into the head loop (no concat of head outputs):
            out_acc = out_acc + jnp.dot(
                o_h.astype(matmul_dtype), wo[lo:lo + Dh, :],
                preferred_element_type=jnp.float32)                    # (S,E)

        out_ref[b] = (out_acc + bo).astype(out_ref.dtype)


# ---------------------------------------------------------------------------
# Wrapper
# ---------------------------------------------------------------------------
def _default_batch_block(batch_size):
    """Dual-TC v7x: keep a parallel grid axis over batch so both TensorCores
    get work. Single-TC v5e/v6e: fold the whole batch into one grid step to
    avoid per-grid-step pipeline overhead."""
    try:
        kind = jax.devices()[0].device_kind.lower()
    except Exception:
        kind = ""
    if "7" in kind:          # v7x-family: two TensorCores per chip
        return 1
    return batch_size


def gptneo_attention(hidden_states, params, *, num_heads, attention_type,
                     window_size, matmul_dtype=jnp.bfloat16, batch_block=None):
    """hidden_states: [B, S, E] float32 -> [B, S, E] float32."""
    B, S, E = hidden_states.shape
    if batch_block is None:
        batch_block = _default_batch_block(B)
    assert B % batch_block == 0

    # Host-side layout plumbing (plain XLA, outside the kernel):
    #  - fuse Wq/Wk/Wv into a single (3E, E) transposed operand,
    #  - transpose activations to (B, E, S) so heads land on sublanes,
    #  - cast matmul operands to bf16 (halves weight/activation DMA bytes;
    #    f32 accumulation and f32 softmax are kept inside the kernel).
    wqkvt = jnp.concatenate(
        [params["wq"].T, params["wk"].T, params["wv"].T], axis=0
    ).astype(matmul_dtype)                                       # (3E, E)
    wo = params["wo"].astype(matmul_dtype)                       # (E, E)
    bo = params["bo"].astype(jnp.float32)                        # (1, E)
    xt = jnp.transpose(hidden_states, (0, 2, 1)).astype(matmul_dtype)  # (B,E,S)

    kernel = functools.partial(
        _gptneo_attn_kernel, num_heads=num_heads,
        attention_type=attention_type, window_size=window_size,
        matmul_dtype=matmul_dtype)

    grid = (B // batch_block,)
    return pl.pallas_call(
        kernel,
        out_shape=jax.ShapeDtypeStruct((B, S, E), hidden_states.dtype),
        grid_spec=pltpu.PrefetchScalarGridSpec(
            num_scalar_prefetch=0,
            grid=grid,
            in_specs=[
                pl.BlockSpec((batch_block, E, S), lambda b: (b, 0, 0)),  # x^T
                pl.BlockSpec((3 * E, E), lambda b: (0, 0)),              # Wqkv^T
                pl.BlockSpec((E, E), lambda b: (0, 0)),                  # Wo
                pl.BlockSpec((1, E), lambda b: (0, 0)),                  # bo
            ],
            out_specs=pl.BlockSpec((batch_block, S, E), lambda b: (b, 0, 0)),
        ),
        compiler_params=pltpu.CompilerParams(
            dimension_semantics=("parallel",)),
    )(xt, wqkvt, wo, bo)


# ---------------------------------------------------------------------------
# Pure-JAX f32 reference (mirrors the torch forward) for a sanity check
# ---------------------------------------------------------------------------
def gptneo_attention_ref(x, params, *, num_heads, attention_type, window_size):
    B, S, E = x.shape
    Dh = E // num_heads
    q = x @ params["wq"]
    k = x @ params["wk"]
    v = x @ params["wv"]
    split = lambda t: t.reshape(B, S, num_heads, Dh).transpose(0, 2, 1, 3)
    q, k, v = split(q), split(k), split(v)
    scores = jnp.einsum("bhqd,bhkd->bhqk", q.astype(jnp.float32),
                        k.astype(jnp.float32))
    i = jnp.arange(S)[:, None]
    j = jnp.arange(S)[None, :]
    causal = j <= i
    if attention_type == "local":
        causal = causal & (j > (i - window_size))
    scores = jnp.where(causal[None, None], scores, jnp.float32(MASKED_BIAS))
    w = jax.nn.softmax(scores, axis=-1)
    o = jnp.einsum("bhqk,bhkd->bhqd", w, v)
    o = o.transpose(0, 2, 1, 3).reshape(B, S, E)
    return o @ params["wo"] + params["bo"][0]


# ---------------------------------------------------------------------------
# Main
# ---------------------------------------------------------------------------
# TODO(synk): layer_past / use_cache (KV cache concat) and output_attentions
# returns are not implemented (forward here is the eval/no-cache path only).
if __name__ == "__main__":
    cfg = GPTNeoConfig()
    B, S, E = 2, cfg.max_position_embeddings, cfg.hidden_size

    key = jax.random.PRNGKey(0)
    kx, kq, kk, kv, ko, kb = jax.random.split(key, 6)
    scale = 0.05
    params = {
        "wq": scale * jax.random.normal(kq, (E, E), jnp.float32),
        "wk": scale * jax.random.normal(kk, (E, E), jnp.float32),
        "wv": scale * jax.random.normal(kv, (E, E), jnp.float32),
        "wo": scale * jax.random.normal(ko, (E, E), jnp.float32),
        "bo": scale * jax.random.normal(kb, (1, E), jnp.float32),
    }
    hidden_states = jax.random.normal(kx, (B, S, E), jnp.float32)

    # Exercise both attention layer types (global = layer 0, local = layer 1).
    for layer_id, attention_type in enumerate(cfg.attention_layers):
        out = gptneo_attention(hidden_states, params,
                               num_heads=cfg.num_heads,
                               attention_type=attention_type,
                               window_size=cfg.window_size)
        out = jax.block_until_ready(out)

        ref = gptneo_attention_ref(hidden_states, params,
                                   num_heads=cfg.num_heads,
                                   attention_type=attention_type,
                                   window_size=cfg.window_size)
        assert out.shape == (B, S, E)
        # Tolerance loosened vs. the pure-f32 version because matmul operands
        # are cast to bf16 (f32 accumulation) and softmax uses the approx
        # EUP reciprocal; observed error is ~1e-3.
        assert jnp.allclose(out, ref, atol=2e-2, rtol=2e-2), (
            f"mismatch vs reference for attention_type={attention_type}")

    print("KERNEL_OK")
</pallas_src>

<mosaic_0001>
module attributes {stable_mosaic.version = 11 : i64} {
  func.func @_gptneo_attn_kernel(%arg0: i32, %arg1: memref<2x32x8xbf16, #tpu.memory_space<vmem>>, %arg2: memref<96x32xbf16, #tpu.memory_space<vmem>>, %arg3: memref<32x32xbf16, #tpu.memory_space<vmem>>, %arg4: memref<1x32xf32, #tpu.memory_space<vmem>>, %arg5: memref<2x8x32xf32, #tpu.memory_space<vmem>>) attributes {dimension_semantics = [#tpu.dimension_semantics<parallel>], iteration_bounds = array<i64: 1>, scalar_prefetch = 0 : i64, scratch_operands = 0 : i64, tpu.core_type = #tpu.core_type<tc>, window_params = [{transform_indices = @transform_0, window_bounds = array<i64: 2, 32, 8>}, {pipeline_mode = #tpu.pipeline_mode<synchronous>, transform_indices = @transform_1, window_bounds = array<i64: 96, 32>}, {pipeline_mode = #tpu.pipeline_mode<synchronous>, transform_indices = @transform_2, window_bounds = array<i64: 32, 32>}, {pipeline_mode = #tpu.pipeline_mode<synchronous>, transform_indices = @transform_3, window_bounds = array<i64: 1, 32>}, {transform_indices = @transform_4, window_bounds = array<i64: 2, 8, 32>}]} {
    %0 = tpu.iota {dimensions = array<i32: 0>} : vector<8x8xi32>
    %1 = tpu.iota {dimensions = array<i32: 1>} : vector<8x8xi32>
    %2 = arith.cmpi sle, %1, %0 : vector<8x8xi32>
    %cst = arith.constant 0.000000e+00 : f32
    %cst_0 = arith.constant -1.000000e+09 : f32
    %3 = vector.broadcast %cst : f32 to vector<8x8xf32>
    %4 = vector.broadcast %cst_0 : f32 to vector<8x8xf32>
    %5 = arith.select %2, %3, %4 : vector<8x8xi1>, vector<8x8xf32>
    %c0 = arith.constant 0 : index
    %c0_1 = arith.constant 0 : index
    %6 = vector.load %arg2[%c0, %c0_1] : memref<96x32xbf16, #tpu.memory_space<vmem>>, vector<96x32xbf16>
    %c0_2 = arith.constant 0 : index
    %c0_3 = arith.constant 0 : index
    %7 = vector.load %arg3[%c0_2, %c0_3] : memref<32x32xbf16, #tpu.memory_space<vmem>>, vector<32x32xbf16>
    %c0_4 = arith.constant 0 : index
    %c0_5 = arith.constant 0 : index
    %8 = vector.load %arg4[%c0_4, %c0_5] : memref<1x32xf32, #tpu.memory_space<vmem>>, vector<1x32xf32>
    %9 = vector.shape_cast %8 : vector<1x32xf32> to vector<32xf32>
    %c0_6 = arith.constant 0 : index
    %c0_7 = arith.constant 0 : index
    %c0_8 = arith.constant 0 : index
    %10 = vector.load %arg1[%c0_6, %c0_7, %c0_8] : memref<2x32x8xbf16, #tpu.memory_space<vmem>>, vector<1x32x8xbf16>
    %11 = vector.shape_cast %10 : vector<1x32x8xbf16> to vector<32x8xbf16>
    %cst_9 = arith.constant dense<0.000000e+00> : vector<96x8xf32>
    %12 = tpu.matmul %6, %11, %cst_9 {dimension_numbers = #tpu.dot_dimension_numbers<[1], [0], [0], [1], [0, 0, 1, 1], [], []>} : vector<96x32xbf16>, vector<32x8xbf16>, vector<96x8xf32> -> vector<96x8xf32>
    %cst_10 = arith.constant 0.000000e+00 : f32
    %13 = vector.broadcast %cst_10 : f32 to vector<8x32xf32>
    %14 = vector.extract_strided_slice %12 {offsets = [0, 0], sizes = [8, 8], strides = [1, 1]} : vector<96x8xf32> to vector<8x8xf32>
    %15 = arith.truncf %14 : vector<8x8xf32> to vector<8x8xbf16>
    %16 = vector.extract_strided_slice %12 {offsets = [32, 0], sizes = [8, 8], strides = [1, 1]} : vector<96x8xf32> to vector<8x8xf32>
    %17 = arith.truncf %16 : vector<8x8xf32> to vector<8x8xbf16>
    %18 = vector.extract_strided_slice %12 {offsets = [64, 0], sizes = [8, 8], strides = [1, 1]} : vector<96x8xf32> to vector<8x8xf32>
    %19 = arith.truncf %18 : vector<8x8xf32> to vector<8x8xbf16>
    %20 = tpu.transpose %15, [1, 0] : vector<8x8xbf16> -> vector<8x8xbf16>
    %cst_11 = arith.constant dense<0.000000e+00> : vector<8x8xf32>
    %21 = tpu.matmul %20, %17, %cst_11 {dimension_numbers = #tpu.dot_dimension_numbers<[1], [0], [0], [1], [0, 0, 1, 1], [], []>} : vector<8x8xbf16>, vector<8x8xbf16>, vector<8x8xf32> -> vector<8x8xf32>
    %22 = arith.addf %21, %5 : vector<8x8xf32>
    %cst_12 = arith.constant dense<0xFF800000> : vector<8xf32>
    %23 = vector.multi_reduction <maximumf>, %22, %cst_12 [1] : vector<8x8xf32> to vector<8xf32>
    %24 = vector.shape_cast %23 : vector<8xf32> to vector<8x1xf32>
    %25 = vector.broadcast %24 : vector<8x1xf32> to vector<8x8xf32>
    %26 = arith.subf %22, %25 : vector<8x8xf32>
    %27 = math.exp %26 : vector<8x8xf32>
    %cst_13 = arith.constant dense<0.000000e+00> : vector<8xf32>
    %28 = vector.multi_reduction <add>, %27, %cst_13 [1] : vector<8x8xf32> to vector<8xf32>
    %29 = vector.shape_cast %28 : vector<8xf32> to vector<8x1xf32>
    %30 = tpu.reciprocal %29 {approx = true} : vector<8x1xf32> -> vector<8x1xf32>
    %31 = vector.broadcast %30 : vector<8x1xf32> to vector<8x8xf32>
    %32 = arith.mulf %27, %31 : vector<8x8xf32>
    %33 = arith.truncf %32 : vector<8x8xf32> to vector<8x8xbf16>
    %34 = tpu.transpose %19, [1, 0] : vector<8x8xbf16> -> vector<8x8xbf16>
    %cst_14 = arith.constant dense<0.000000e+00> : vector<8x8xf32>
    %35 = tpu.matmul %33, %34, %cst_14 {dimension_numbers = #tpu.dot_dimension_numbers<[1], [0], [0], [1], [0, 0, 1, 1], [], []>} : vector<8x8xbf16>, vector<8x8xbf16>, vector<8x8xf32> -> vector<8x8xf32>
    %36 = arith.truncf %35 : vector<8x8xf32> to vector<8x8xbf16>
    %37 = vector.extract_strided_slice %7 {offsets = [0, 0], sizes = [8, 32], strides = [1, 1]} : vector<32x32xbf16> to vector<8x32xbf16>
    %cst_15 = arith.constant dense<0.000000e+00> : vector<8x32xf32>
    %38 = tpu.matmul %36, %37, %cst_15 {dimension_numbers = #tpu.dot_dimension_numbers<[1], [0], [0], [1], [0, 0, 1, 1], [], []>} : vector<8x8xbf16>, vector<8x32xbf16>, vector<8x32xf32> -> vector<8x32xf32>
    %39 = arith.addf %13, %38 : vector<8x32xf32>
    %40 = vector.extract_strided_slice %12 {offsets = [8, 0], sizes = [8, 8], strides = [1, 1]} : vector<96x8xf32> to vector<8x8xf32>
    %41 = arith.truncf %40 : vector<8x8xf32> to vector<8x8xbf16>
    %42 = vector.extract_strided_slice %12 {offsets = [40, 0], sizes = [8, 8], strides = [1, 1]} : vector<96x8xf32> to vector<8x8xf32>
    %43 = arith.truncf %42 : vector<8x8xf32> to vector<8x8xbf16>
    %44 = vector.extract_strided_slice %12 {offsets = [72, 0], sizes = [8, 8], strides = [1, 1]} : vector<96x8xf32> to vector<8x8xf32>
    %45 = arith.truncf %44 : vector<8x8xf32> to vector<8x8xbf16>
    %46 = tpu.transpose %41, [1, 0] : vector<8x8xbf16> -> vector<8x8xbf16>
    %cst_16 = arith.constant dense<0.000000e+00> : vector<8x8xf32>
    %47 = tpu.matmul %46, %43, %cst_16 {dimension_numbers = #tpu.dot_dimension_numbers<[1], [0], [0], [1], [0, 0, 1, 1], [], []>} : vector<8x8xbf16>, vector<8x8xbf16>, vector<8x8xf32> -> vector<8x8xf32>
    %48 = arith.addf %47, %5 : vector<8x8xf32>
    %cst_17 = arith.constant dense<0xFF800000> : vector<8xf32>
    %49 = vector.multi_reduction <maximumf>, %48, %cst_17 [1] : vector<8x8xf32> to vector<8xf32>
    %50 = vector.shape_cast %49 : vector<8xf32> to vector<8x1xf32>
    %51 = vector.broadcast %50 : vector<8x1xf32> to vector<8x8xf32>
    %52 = arith.subf %48, %51 : vector<8x8xf32>
    %53 = math.exp %52 : vector<8x8xf32>
    %cst_18 = arith.constant dense<0.000000e+00> : vector<8xf32>
    %54 = vector.multi_reduction <add>, %53, %cst_18 [1] : vector<8x8xf32> to vector<8xf32>
    %55 = vector.shape_cast %54 : vector<8xf32> to vector<8x1xf32>
    %56 = tpu.reciprocal %55 {approx = true} : vector<8x1xf32> -> vector<8x1xf32>
    %57 = vector.broadcast %56 : vector<8x1xf32> to vector<8x8xf32>
    %58 = arith.mulf %53, %57 : vector<8x8xf32>
    %59 = arith.truncf %58 : vector<8x8xf32> to vector<8x8xbf16>
    %60 = tpu.transpose %45, [1, 0] : vector<8x8xbf16> -> vector<8x8xbf16>
    %cst_19 = arith.constant dense<0.000000e+00> : vector<8x8xf32>
    %61 = tpu.matmul %59, %60, %cst_19 {dimension_numbers = #tpu.dot_dimension_numbers<[1], [0], [0], [1], [0, 0, 1, 1], [], []>} : vector<8x8xbf16>, vector<8x8xbf16>, vector<8x8xf32> -> vector<8x8xf32>
    %62 = arith.truncf %61 : vector<8x8xf32> to vector<8x8xbf16>
    %63 = vector.extract_strided_slice %7 {offsets = [8, 0], sizes = [8, 32], strides = [1, 1]} : vector<32x32xbf16> to vector<8x32xbf16>
    %cst_20 = arith.constant dense<0.000000e+00> : vector<8x32xf32>
    %64 = tpu.matmul %62, %63, %cst_20 {dimension_numbers = #tpu.dot_dimension_numbers<[1], [0], [0], [1], [0, 0, 1, 1], [], []>} : vector<8x8xbf16>, vector<8x32xbf16>, vector<8x32xf32> -> vector<8x32xf32>
    %65 = arith.addf %39, %64 : vector<8x32xf32>
    %66 = vector.extract_strided_slice %12 {offsets = [16, 0], sizes = [8, 8], strides = [1, 1]} : vector<96x8xf32> to vector<8x8xf32>
    %67 = arith.truncf %66 : vector<8x8xf32> to vector<8x8xbf16>
    %68 = vector.extract_strided_slice %12 {offsets = [48, 0], sizes = [8, 8], strides = [1, 1]} : vector<96x8xf32> to vector<8x8xf32>
    %69 = arith.truncf %68 : vector<8x8xf32> to vector<8x8xbf16>
    %70 = vector.extract_strided_slice %12 {offsets = [80, 0], sizes = [8, 8], strides = [1, 1]} : vector<96x8xf32> to vector<8x8xf32>
    %71 = arith.truncf %70 : vector<8x8xf32> to vector<8x8xbf16>
    %72 = tpu.transpose %67, [1, 0] : vector<8x8xbf16> -> vector<8x8xbf16>
    %cst_21 = arith.constant dense<0.000000e+00> : vector<8x8xf32>
    %73 = tpu.matmul %72, %69, %cst_21 {dimension_numbers = #tpu.dot_dimension_numbers<[1], [0], [0], [1], [0, 0, 1, 1], [], []>} : vector<8x8xbf16>, vector<8x8xbf16>, vector<8x8xf32> -> vector<8x8xf32>
    %74 = arith.addf %73, %5 : vector<8x8xf32>
    %cst_22 = arith.constant dense<0xFF800000> : vector<8xf32>
    %75 = vector.multi_reduction <maximumf>, %74, %cst_22 [1] : vector<8x8xf32> to vector<8xf32>
    %76 = vector.shape_cast %75 : vector<8xf32> to vector<8x1xf32>
    %77 = vector.broadcast %76 : vector<8x1xf32> to vector<8x8xf32>
    %78 = arith.subf %74, %77 : vector<8x8xf32>
    %79 = math.exp %78 : vector<8x8xf32>
    %cst_23 = arith.constant dense<0.000000e+00> : vector<8xf32>
    %80 = vector.multi_reduction <add>, %79, %cst_23 [1] : vector<8x8xf32> to vector<8xf32>
    %81 = vector.shape_cast %80 : vector<8xf32> to vector<8x1xf32>
    %82 = tpu.reciprocal %81 {approx = true} : vector<8x1xf32> -> vector<8x1xf32>
    %83 = vector.broadcast %82 : vector<8x1xf32> to vector<8x8xf32>
    %84 = arith.mulf %79, %83 : vector<8x8xf32>
    %85 = arith.truncf %84 : vector<8x8xf32> to vector<8x8xbf16>
    %86 = tpu.transpose %71, [1, 0] : vector<8x8xbf16> -> vector<8x8xbf16>
    %cst_24 = arith.constant dense<0.000000e+00> : vector<8x8xf32>
    %87 = tpu.matmul %85, %86, %cst_24 {dimension_numbers = #tpu.dot_dimension_numbers<[1], [0], [0], [1], [0, 0, 1, 1], [], []>} : vector<8x8xbf16>, vector<8x8xbf16>, vector<8x8xf32> -> vector<8x8xf32>
    %88 = arith.truncf %87 : vector<8x8xf32> to vector<8x8xbf16>
    %89 = vector.extract_strided_slice %7 {offsets = [16, 0], sizes = [8, 32], strides = [1, 1]} : vector<32x32xbf16> to vector<8x32xbf16>
    %cst_25 = arith.constant dense<0.000000e+00> : vector<8x32xf32>
    %90 = tpu.matmul %88, %89, %cst_25 {dimension_numbers = #tpu.dot_dimension_numbers<[1], [0], [0], [1], [0, 0, 1, 1], [], []>} : vector<8x8xbf16>, vector<8x32xbf16>, vector<8x32xf32> -> vector<8x32xf32>
    %91 = arith.addf %65, %90 : vector<8x32xf32>
    %92 = vector.extract_strided_slice %12 {offsets = [24, 0], sizes = [8, 8], strides = [1, 1]} : vector<96x8xf32> to vector<8x8xf32>
    %93 = arith.truncf %92 : vector<8x8xf32> to vector<8x8xbf16>
    %94 = vector.extract_strided_slice %12 {offsets = [56, 0], sizes = [8, 8], strides = [1, 1]} : vector<96x8xf32> to vector<8x8xf32>
    %95 = arith.truncf %94 : vector<8x8xf32> to vector<8x8xbf16>
    %96 = vector.extract_strided_slice %12 {offsets = [88, 0], sizes = [8, 8], strides = [1, 1]} : vector<96x8xf32> to vector<8x8xf32>
    %97 = arith.truncf %96 : vector<8x8xf32> to vector<8x8xbf16>
    %98 = tpu.transpose %93, [1, 0] : vector<8x8xbf16> -> vector<8x8xbf16>
    %cst_26 = arith.constant dense<0.000000e+00> : vector<8x8xf32>
    %99 = tpu.matmul %98, %95, %cst_26 {dimension_numbers = #tpu.dot_dimension_numbers<[1], [0], [0], [1], [0, 0, 1, 1], [], []>} : vector<8x8xbf16>, vector<8x8xbf16>, vector<8x8xf32> -> vector<8x8xf32>
    %100 = arith.addf %99, %5 : vector<8x8xf32>
    %cst_27 = arith.constant dense<0xFF800000> : vector<8xf32>
    %101 = vector.multi_reduction <maximumf>, %100, %cst_27 [1] : vector<8x8xf32> to vector<8xf32>
    %102 = vector.shape_cast %101 : vector<8xf32> to vector<8x1xf32>
    %103 = vector.broadcast %102 : vector<8x1xf32> to vector<8x8xf32>
    %104 = arith.subf %100, %103 : vector<8x8xf32>
    %105 = math.exp %104 : vector<8x8xf32>
    %cst_28 = arith.constant dense<0.000000e+00> : vector<8xf32>
    %106 = vector.multi_reduction <add>, %105, %cst_28 [1] : vector<8x8xf32> to vector<8xf32>
    %107 = vector.shape_cast %106 : vector<8xf32> to vector<8x1xf32>
    %108 = tpu.reciprocal %107 {approx = true} : vector<8x1xf32> -> vector<8x1xf32>
    %109 = vector.broadcast %108 : vector<8x1xf32> to vector<8x8xf32>
    %110 = arith.mulf %105, %109 : vector<8x8xf32>
    %111 = arith.truncf %110 : vector<8x8xf32> to vector<8x8xbf16>
    %112 = tpu.transpose %97, [1, 0] : vector<8x8xbf16> -> vector<8x8xbf16>
    %cst_29 = arith.constant dense<0.000000e+00> : vector<8x8xf32>
    %113 = tpu.matmul %111, %112, %cst_29 {dimension_numbers = #tpu.dot_dimension_numbers<[1], [0], [0], [1], [0, 0, 1, 1], [], []>} : vector<8x8xbf16>, vector<8x8xbf16>, vector<8x8xf32> -> vector<8x8xf32>
    %114 = arith.truncf %113 : vector<8x8xf32> to vector<8x8xbf16>
    %115 = vector.extract_strided_slice %7 {offsets = [24, 0], sizes = [8, 32], strides = [1, 1]} : vector<32x32xbf16> to vector<8x32xbf16>
    %cst_30 = arith.constant dense<0.000000e+00> : vector<8x32xf32>
    %116 = tpu.matmul %114, %115, %cst_30 {dimension_numbers = #tpu.dot_dimension_numbers<[1], [0], [0], [1], [0, 0, 1, 1], [], []>} : vector<8x8xbf16>, vector<8x32xbf16>, vector<8x32xf32> -> vector<8x32xf32>
    %117 = arith.addf %91, %116 : vector<8x32xf32>
    %118 = vector.shape_cast %9 : vector<32xf32> to vector<1x32xf32>
    %119 = vector.broadcast %118 : vector<1x32xf32> to vector<8x32xf32>
    %120 = arith.addf %117, %119 : vector<8x32xf32>
    %c0_31 = arith.constant 0 : index
    %c0_32 = arith.constant 0 : index
    %c0_33 = arith.constant 0 : index
    %121 = vector.load %arg5[%c0_31, %c0_32, %c0_33] : memref<2x8x32xf32, #tpu.memory_space<vmem>>, vector<1x8x32xf32>
    %122 = vector.shape_cast %121 : vector<1x8x32xf32> to vector<8x32xf32>
    %123 = vector.shape_cast %120 : vector<8x32xf32> to vector<1x8x32xf32>
    tpu.vector_store %arg5[%c0_31, %c0_32, %c0_33], %123 {strides = array<i32>} : memref<2x8x32xf32, #tpu.memory_space<vmem>>, vector<1x8x32xf32>,
    %c1 = arith.constant 1 : index
    %c0_34 = arith.constant 0 : index
    %c0_35 = arith.constant 0 : index
    %124 = vector.load %arg1[%c1, %c0_34, %c0_35] : memref<2x32x8xbf16, #tpu.memory_space<vmem>>, vector<1x32x8xbf16>
    %125 = vector.shape_cast %124 : vector<1x32x8xbf16> to vector<32x8xbf16>
    %cst_36 = arith.constant dense<0.000000e+00> : vector<96x8xf32>
    %126 = tpu.matmul %6, %125, %cst_36 {dimension_numbers = #tpu.dot_dimension_numbers<[1], [0], [0], [1], [0, 0, 1, 1], [], []>} : vector<96x32xbf16>, vector<32x8xbf16>, vector<96x8xf32> -> vector<96x8xf32>
    %cst_37 = arith.constant 0.000000e+00 : f32
    %127 = vector.broadcast %cst_37 : f32 to vector<8x32xf32>
    %128 = vector.extract_strided_slice %126 {offsets = [0, 0], sizes = [8, 8], strides = [1, 1]} : vector<96x8xf32> to vector<8x8xf32>
    %129 = arith.truncf %128 : vector<8x8xf32> to vector<8x8xbf16>
    %130 = vector.extract_strided_slice %126 {offsets = [32, 0], sizes = [8, 8], strides = [1, 1]} : vector<96x8xf32> to vector<8x8xf32>
    %131 = arith.truncf %130 : vector<8x8xf32> to vector<8x8xbf16>
    %132 = vector.extract_strided_slice %126 {offsets = [64, 0], sizes = [8, 8], strides = [1, 1]} : vector<96x8xf32> to vector<8x8xf32>
    %133 = arith.truncf %132 : vector<8x8xf32> to vector<8x8xbf16>
    %134 = tpu.transpose %129, [1, 0] : vector<8x8xbf16> -> vector<8x8xbf16>
    %cst_38 = arith.constant dense<0.000000e+00> : vector<8x8xf32>
    %135 = tpu.matmul %134, %131, %cst_38 {dimension_numbers = #tpu.dot_dimension_numbers<[1], [0], [0], [1], [0, 0, 1, 1], [], []>} : vector<8x8xbf16>, vector<8x8xbf16>, vector<8x8xf32> -> vector<8x8xf32>
    %136 = arith.addf %135, %5 : vector<8x8xf32>
    %cst_39 = arith.constant dense<0xFF800000> : vector<8xf32>
    %137 = vector.multi_reduction <maximumf>, %136, %cst_39 [1] : vector<8x8xf32> to vector<8xf32>
    %138 = vector.shape_cast %137 : vector<8xf32> to vector<8x1xf32>
    %139 = vector.broadcast %138 : vector<8x1xf32> to vector<8x8xf32>
    %140 = arith.subf %136, %139 : vector<8x8xf32>
    %141 = math.exp %140 : vector<8x8xf32>
    %cst_40 = arith.constant dense<0.000000e+00> : vector<8xf32>
    %142 = vector.multi_reduction <add>, %141, %cst_40 [1] : vector<8x8xf32> to vector<8xf32>
    %143 = vector.shape_cast %142 : vector<8xf32> to vector<8x1xf32>
    %144 = tpu.reciprocal %143 {approx = true} : vector<8x1xf32> -> vector<8x1xf32>
    %145 = vector.broadcast %144 : vector<8x1xf32> to vector<8x8xf32>
    %146 = arith.mulf %141, %145 : vector<8x8xf32>
    %147 = arith.truncf %146 : vector<8x8xf32> to vector<8x8xbf16>
    %148 = tpu.transpose %133, [1, 0] : vector<8x8xbf16> -> vector<8x8xbf16>
    %cst_41 = arith.constant dense<0.000000e+00> : vector<8x8xf32>
    %149 = tpu.matmul %147, %148, %cst_41 {dimension_numbers = #tpu.dot_dimension_numbers<[1], [0], [0], [1], [0, 0, 1, 1], [], []>} : vector<8x8xbf16>, vector<8x8xbf16>, vector<8x8xf32> -> vector<8x8xf32>
    %150 = arith.truncf %149 : vector<8x8xf32> to vector<8x8xbf16>
    %151 = vector.extract_strided_slice %7 {offsets = [0, 0], sizes = [8, 32], strides = [1, 1]} : vector<32x32xbf16> to vector<8x32xbf16>
    %cst_42 = arith.constant dense<0.000000e+00> : vector<8x32xf32>
    %152 = tpu.matmul %150, %151, %cst_42 {dimension_numbers = #tpu.dot_dimension_numbers<[1], [0], [0], [1], [0, 0, 1, 1], [], []>} : vector<8x8xbf16>, vector<8x32xbf16>, vector<8x32xf32> -> vector<8x32xf32>
    %153 = arith.addf %127, %152 : vector<8x32xf32>
    %154 = vector.extract_strided_slice %126 {offsets = [8, 0], sizes = [8, 8], strides = [1, 1]} : vector<96x8xf32> to vector<8x8xf32>
    %155 = arith.truncf %154 : vector<8x8xf32> to vector<8x8xbf16>
    %156 = vector.extract_strided_slice %126 {offsets = [40, 0], sizes = [8, 8], strides = [1, 1]} : vector<96x8xf32> to vector<8x8xf32>
    %157 = arith.truncf %156 : vector<8x8xf32> to vector<8x8xbf16>
    %158 = vector.extract_strided_slice %126 {offsets = [72, 0], sizes = [8, 8], strides = [1, 1]} : vector<96x8xf32> to vector<8x8xf32>
    %159 = arith.truncf %158 : vector<8x8xf32> to vector<8x8xbf16>
    %160 = tpu.transpose %155, [1, 0] : vector<8x8xbf16> -> vector<8x8xbf16>
    %cst_43 = arith.constant dense<0.000000e+00> : vector<8x8xf32>
    %161 = tpu.matmul %160, %157, %cst_43 {dimension_numbers = #tpu.dot_dimension_numbers<[1], [0], [0], [1], [0, 0, 1, 1], [], []>} : vector<8x8xbf16>, vector<8x8xbf16>, vector<8x8xf32> -> vector<8x8xf32>
    %162 = arith.addf %161, %5 : vector<8x8xf32>
    %cst_44 = arith.constant dense<0xFF800000> : vector<8xf32>
    %163 = vector.multi_reduction <maximumf>, %162, %cst_44 [1] : vector<8x8xf32> to vector<8xf32>
    %164 = vector.shape_cast %163 : vector<8xf32> to vector<8x1xf32>
    %165 = vector.broadcast %164 : vector<8x1xf32> to vector<8x8xf32>
    %166 = arith.subf %162, %165 : vector<8x8xf32>
    %167 = math.exp %166 : vector<8x8xf32>
    %cst_45 = arith.constant dense<0.000000e+00> : vector<8xf32>
    %168 = vector.multi_reduction <add>, %167, %cst_45 [1] : vector<8x8xf32> to vector<8xf32>
    %169 = vector.shape_cast %168 : vector<8xf32> to vector<8x1xf32>
    %170 = tpu.reciprocal %169 {approx = true} : vector<8x1xf32> -> vector<8x1xf32>
    %171 = vector.broadcast %170 : vector<8x1xf32> to vector<8x8xf32>
    %172 = arith.mulf %167, %171 : vector<8x8xf32>
    %173 = arith.truncf %172 : vector<8x8xf32> to vector<8x8xbf16>
    %174 = tpu.transpose %159, [1, 0] : vector<8x8xbf16> -> vector<8x8xbf16>
    %cst_46 = arith.constant dense<0.000000e+00> : vector<8x8xf32>
    %175 = tpu.matmul %173, %174, %cst_46 {dimension_numbers = #tpu.dot_dimension_numbers<[1], [0], [0], [1], [0, 0, 1, 1], [], []>} : vector<8x8xbf16>, vector<8x8xbf16>, vector<8x8xf32> -> vector<8x8xf32>
    %176 = arith.truncf %175 : vector<8x8xf32> to vector<8x8xbf16>
    %177 = vector.extract_strided_slice %7 {offsets = [8, 0], sizes = [8, 32], strides = [1, 1]} : vector<32x32xbf16> to vector<8x32xbf16>
    %cst_47 = arith.constant dense<0.000000e+00> : vector<8x32xf32>
    %178 = tpu.matmul %176, %177, %cst_47 {dimension_numbers = #tpu.dot_dimension_numbers<[1], [0], [0], [1], [0, 0, 1, 1], [], []>} : vector<8x8xbf16>, vector<8x32xbf16>, vector<8x32xf32> -> vector<8x32xf32>
    %179 = arith.addf %153, %178 : vector<8x32xf32>
    %180 = vector.extract_strided_slice %126 {offsets = [16, 0], sizes = [8, 8], strides = [1, 1]} : vector<96x8xf32> to vector<8x8xf32>
    %181 = arith.truncf %180 : vector<8x8xf32> to vector<8x8xbf16>
    %182 = vector.extract_strided_slice %126 {offsets = [48, 0], sizes = [8, 8], strides = [1, 1]} : vector<96x8xf32> to vector<8x8xf32>
    %183 = arith.truncf %182 : vector<8x8xf32> to vector<8x8xbf16>
    %184 = vector.extract_strided_slice %126 {offsets = [80, 0], sizes = [8, 8], strides = [1, 1]} : vector<96x8xf32> to vector<8x8xf32>
    %185 = arith.truncf %184 : vector<8x8xf32> to vector<8x8xbf16>
    %186 = tpu.transpose %181, [1, 0] : vector<8x8xbf16> -> vector<8x8xbf16>
    %cst_48 = arith.constant dense<0.000000e+00> : vector<8x8xf32>
    %187 = tpu.matmul %186, %183, %cst_48 {dimension_numbers = #tpu.dot_dimension_numbers<[1], [0], [0], [1], [0, 0, 1, 1], [], []>} : vector<8x8xbf16>, vector<8x8xbf16>, vector<8x8xf32> -> vector<8x8xf32>
    %188 = arith.addf %187, %5 : vector<8x8xf32>
    %cst_49 = arith.constant dense<0xFF800000> : vector<8xf32>
    %189 = vector.multi_reduction <maximumf>, %188, %cst_49 [1] : vector<8x8xf32> to vector<8xf32>
    %190 = vector.shape_cast %189 : vector<8xf32> to vector<8x1xf32>
    %191 = vector.broadcast %190 : vector<8x1xf32> to vector<8x8xf32>
    %192 = arith.subf %188, %191 : vector<8x8xf32>
    %193 = math.exp %192 : vector<8x8xf32>
    %cst_50 = arith.constant dense<0.000000e+00> : vector<8xf32>
    %194 = vector.multi_reduction <add>, %193, %cst_50 [1] : vector<8x8xf32> to vector<8xf32>
    %195 = vector.shape_cast %194 : vector<8xf32> to vector<8x1xf32>
    %196 = tpu.reciprocal %195 {approx = true} : vector<8x1xf32> -> vector<8x1xf32>
    %197 = vector.broadcast %196 : vector<8x1xf32> to vector<8x8xf32>
    %198 = arith.mulf %193, %197 : vector<8x8xf32>
    %199 = arith.truncf %198 : vector<8x8xf32> to vector<8x8xbf16>
    %200 = tpu.transpose %185, [1, 0] : vector<8x8xbf16> -> vector<8x8xbf16>
    %cst_51 = arith.constant dense<0.000000e+00> : vector<8x8xf32>
    %201 = tpu.matmul %199, %200, %cst_51 {dimension_numbers = #tpu.dot_dimension_numbers<[1], [0], [0], [1], [0, 0, 1, 1], [], []>} : vector<8x8xbf16>, vector<8x8xbf16>, vector<8x8xf32> -> vector<8x8xf32>
    %202 = arith.truncf %201 : vector<8x8xf32> to vector<8x8xbf16>
    %203 = vector.extract_strided_slice %7 {offsets = [16, 0], sizes = [8, 32], strides = [1, 1]} : vector<32x32xbf16> to vector<8x32xbf16>
    %cst_52 = arith.constant dense<0.000000e+00> : vector<8x32xf32>
    %204 = tpu.matmul %202, %203, %cst_52 {dimension_numbers = #tpu.dot_dimension_numbers<[1], [0], [0], [1], [0, 0, 1, 1], [], []>} : vector<8x8xbf16>, vector<8x32xbf16>, vector<8x32xf32> -> vector<8x32xf32>
    %205 = arith.addf %179, %204 : vector<8x32xf32>
    %206 = vector.extract_strided_slice %126 {offsets = [24, 0], sizes = [8, 8], strides = [1, 1]} : vector<96x8xf32> to vector<8x8xf32>
    %207 = arith.truncf %206 : vector<8x8xf32> to vector<8x8xbf16>
    %208 = vector.extract_strided_slice %126 {offsets = [56, 0], sizes = [8, 8], strides = [1, 1]} : vector<96x8xf32> to vector<8x8xf32>
    %209 = arith.truncf %208 : vector<8x8xf32> to vector<8x8xbf16>
    %210 = vector.extract_strided_slice %126 {offsets = [88, 0], sizes = [8, 8], strides = [1, 1]} : vector<96x8xf32> to vector<8x8xf32>
    %211 = arith.truncf %210 : vector<8x8xf32> to vector<8x8xbf16>
    %212 = tpu.transpose %207, [1, 0] : vector<8x8xbf16> -> vector<8x8xbf16>
    %cst_53 = arith.constant dense<0.000000e+00> : vector<8x8xf32>
    %213 = tpu.matmul %212, %209, %cst_53 {dimension_numbers = #tpu.dot_dimension_numbers<[1], [0], [0], [1], [0, 0, 1, 1], [], []>} : vector<8x8xbf16>, vector<8x8xbf16>, vector<8x8xf32> -> vector<8x8xf32>
    %214 = arith.addf %213, %5 : vector<8x8xf32>
    %cst_54 = arith.constant dense<0xFF800000> : vector<8xf32>
    %215 = vector.multi_reduction <maximumf>, %214, %cst_54 [1] : vector<8x8xf32> to vector<8xf32>
    %216 = vector.shape_cast %215 : vector<8xf32> to vector<8x1xf32>
    %217 = vector.broadcast %216 : vector<8x1xf32> to vector<8x8xf32>
    %218 = arith.subf %214, %217 : vector<8x8xf32>
    %219 = math.exp %218 : vector<8x8xf32>
    %cst_55 = arith.constant dense<0.000000e+00> : vector<8xf32>
    %220 = vector.multi_reduction <add>, %219, %cst_55 [1] : vector<8x8xf32> to vector<8xf32>
    %221 = vector.shape_cast %220 : vector<8xf32> to vector<8x1xf32>
    %222 = tpu.reciprocal %221 {approx = true} : vector<8x1xf32> -> vector<8x1xf32>
    %223 = vector.broadcast %222 : vector<8x1xf32> to vector<8x8xf32>
    %224 = arith.mulf %219, %223 : vector<8x8xf32>
    %225 = arith.truncf %224 : vector<8x8xf32> to vector<8x8xbf16>
    %226 = tpu.transpose %211, [1, 0] : vector<8x8xbf16> -> vector<8x8xbf16>
    %cst_56 = arith.constant dense<0.000000e+00> : vector<8x8xf32>
    %227 = tpu.matmul %225, %226, %cst_56 {dimension_numbers = #tpu.dot_dimension_numbers<[1], [0], [0], [1], [0, 0, 1, 1], [], []>} : vector<8x8xbf16>, vector<8x8xbf16>, vector<8x8xf32> -> vector<8x8xf32>
    %228 = arith.truncf %227 : vector<8x8xf32> to vector<8x8xbf16>
    %229 = vector.extract_strided_slice %7 {offsets = [24, 0], sizes = [8, 32], strides = [1, 1]} : vector<32x32xbf16> to vector<8x32xbf16>
    %cst_57 = arith.constant dense<0.000000e+00> : vector<8x32xf32>
    %230 = tpu.matmul %228, %229, %cst_57 {dimension_numbers = #tpu.dot_dimension_numbers<[1], [0], [0], [1], [0, 0, 1, 1], [], []>} : vector<8x8xbf16>, vector<8x32xbf16>, vector<8x32xf32> -> vector<8x32xf32>
    %231 = arith.addf %205, %230 : vector<8x32xf32>
    %232 = vector.shape_cast %9 : vector<32xf32> to vector<1x32xf32>
    %233 = vector.broadcast %232 : vector<1x32xf32> to vector<8x32xf32>
    %234 = arith.addf %231, %233 : vector<8x32xf32>
    %c1_58 = arith.constant 1 : index
    %c0_59 = arith.constant 0 : index
    %c0_60 = arith.constant 0 : index
    %235 = vector.load %arg5[%c1_58, %c0_59, %c0_60] : memref<2x8x32xf32, #tpu.memory_space<vmem>>, vector<1x8x32xf32>
    %236 = vector.shape_cast %235 : vector<1x8x32xf32> to vector<8x32xf32>
    %237 = vector.shape_cast %234 : vector<8x32xf32> to vector<1x8x32xf32>
    tpu.vector_store %arg5[%c1_58, %c0_59, %c0_60], %237 {strides = array<i32>} : memref<2x8x32xf32, #tpu.memory_space<vmem>>, vector<1x8x32xf32>,
    return
  }
  func.func @transform_0(%arg0: i32) -> (i32, i32, i32) {
    %c0_i32 = arith.constant 0 : i32
    %c0_i32_0 = arith.constant 0 : i32
    %c0_i32_1 = arith.constant 0 : i32
    return %arg0, %c0_i32, %c0_i32_0 : i32, i32, i32
  }
  func.func @transform_1(%arg0: i32) -> (i32, i32) {
    %c0_i32 = arith.constant 0 : i32
    %c0_i32_0 = arith.constant 0 : i32
    %c0_i32_1 = arith.constant 0 : i32
    return %c0_i32, %c0_i32_0 : i32, i32
  }
  func.func @transform_2(%arg0: i32) -> (i32, i32) {
    %c0_i32 = arith.constant 0 : i32
    %c0_i32_0 = arith.constant 0 : i32
    %c0_i32_1 = arith.constant 0 : i32
    return %c0_i32, %c0_i32_0 : i32, i32
  }
  func.func @transform_3(%arg0: i32) -> (i32, i32) {
    %c0_i32 = arith.constant 0 : i32
    %c0_i32_0 = arith.constant 0 : i32
    %c0_i32_1 = arith.constant 0 : i32
    return %c0_i32, %c0_i32_0 : i32, i32
  }
  func.func @transform_4(%arg0: i32) -> (i32, i32, i32) {
    %c0_i32 = arith.constant 0 : i32
    %c0_i32_0 = arith.constant 0 : i32
    %c0_i32_1 = arith.constant 0 : i32
    return %arg0, %c0_i32, %c0_i32_0 : i32, i32, i32
  }
}

</mosaic_0001>

<bundles_post_ra>
// kernel: tpu_custom_call.1
= control target key start
LH: loop header
LB: loop body
LE: loop exit
PB: predicated region body
PF: predicated region fallthrough
CT: control target
= control target key end

     0   :  { %vm88_vm0 = vcmask 261120   ;;  %s2370_s0 = inlined_call_operand.vmem [shape: bf16[2,32,8], index: 0, kind: input, shape index: {}]   ;;  %s2371_s1 = inlined_call_operand.vmem [shape: bf16[96,32], index: 1, kind: input, shape index: {}]   ;;  %s2372_s2 = inlined_call_operand.vmem [shape: bf16[32,32], index: 2, kind: input, shape index: {}]   ;;  %s2373_s3 = inlined_call_operand.vmem [shape: f32[1,32], index: 3, kind: input, shape index: {}]   ;;  %s2374_s4 = inlined_call_operand.hbm [shape: f32[2,8,32], index: 4, kind: output, shape index: {}]  }
   0x1   :  { %v1965_v0 = vld [vmem:[%s2370_s0] sm:$0xff]   ;;  %v1966_v1 = vld [vmem:[%s2370_s0 + $0x8] sm:$0xff]   ;;  %v2083_v4 = vld [vmem:[%s2371_s1 + $0x10] sm:$0xff]  }
   0x2   :  { %1782 = vmatprep.subr.bf16.mxu0 %v1965_v0  ;;  %v2071_v2 = vld [vmem:[%s2371_s1] sm:$0xff]   ;;  %v2078_v3 = vld [vmem:[%s2371_s1 + $0x8] sm:$0xff]  }
   0x3   :  { %1783 = vmatpush3.bf16.msra.mxu0 %v1965_v0  ;;  %1786 = vmatprep.mubr.msk.bf16.mxu0 %vm88_vm0, %v2071_v2 }
   0x4   :  { %1784 = vmatprep.subr.bf16.mxu0 %v1966_v1 }
   0x7   :  { %1785 = vmatpush3.bf16.msra.mxu0 %v1966_v1 }
   0x8   :  { %9 = vsyncpa [#allocation3], 0  ;;  %v2092_v5 = vld [vmem:[%s2371_s1 + $0x18] sm:$0xff]   ;;  %v2031_v6 = vmov 0.0   ;;  %vm2032_vm1 = vmmov 0   ;;  %vm211_vm2 = vcmask 1043456   ;;  %v19_v21 = vlaneseq }
   0x9   :  { %1798 = vmatprep.subr.bf16.mxu1 %v2031_v6  ;;  %1800 = vmatprep.mubr.msk.bf16.mxu1 %vm2032_vm1, %v2031_v6  ;;  %vm207_vm3 = vcmask 64512   ;;  %v2116_v19 = vld [vmem:[%s2371_s1 + $0x20] sm:$0xff]   ;;  %v2121_v20 = vld [vmem:[%s2371_s1 + $0x28] sm:$0xff]   ;;  %v2033_v24 = vmov -1e+09  }
   0xa   :  { %1787 = vmatmul.mubr.msk.bf16.vlgmr.msra.gmra.mrb[0].mxu0 %vm88_vm0, %v2078_v3  ;;  %1822 = vmatprep.subr.bf16.mxu0 %v2031_v6  ;;  %v20_v22 = vshrl.u32 %v19_v21, 7  ;;  %v22_v23 = vand.u32 127, %v19_v21 }
   0xb   :  { %1790 = vmatprep.mubr.msk.bf16.mxu0 %vm88_vm0, %v2083_v4 }
   0xc   :  { %vm23_vm4 = vcmp.le.s32.totalorder %v22_v23, %v20_v22 }
   0xd   :  { %v2129_v25 = vsel %vm23_vm4, 0.0, %v2033_v24 }
  0x12   :  { %1791 = vmatmul.mubr.msk.bf16.gmra.mrb[4].mxu0 %vm88_vm0, %v2092_v5 }
  0x13   :  { %1794 = vmatprep.mubr.msk.bf16.mxu0 %vm88_vm0, %v2116_v19 }
  0x1a   :  { %1795 = vmatmul.mubr.msk.bf16.gmra.mrb[8].mxu0 %vm88_vm0, %v2121_v20 }
  0x1b   :  { %1824 = vmatprep.mubr.msk.bf16.mxu0 %vm2032_vm1, %v2031_v6 }
  0xdd   :  { %v2100_v7 = vpop.f32.mrb[0].mxu0 }
  0xde   :  { %v141_v8 = vpop.f32.mrb[1].mxu0 }
  0xdf   :  { %v2102_v9 = vpop.f32.mrb[2].mxu0  ;;  %v188_v10 = vpack.c.bf16 %v141_v8, %v141_v8 }
  0xe0   :  { %v144_v11 = vpop.f32.mrb[3].mxu0 }
  0xe1   :  { %191 = vxpose.xlu0.c.b16.start.end [1/1] (short) (narrow) %v188_v10, 16  ;;  %v314_v43 = vpack.c.bf16 %v144_v11, %v144_v11  ;;  %v38_v11 = vld [vmem:[%s2372_s2 + $0x4] sm:$0xf] }
  0xe5   :  { %v2104_v12 = vpop.f32.mrb[4].mxu0 }
  0xe6   :  { %v157_v13 = vpop.f32.mrb[5].mxu0 }
  0xe7   :  { %v189_v14 = vpack.c.bf16 %v157_v13, %v157_v13  ;;  %v2106_v15 = vpop.f32.mrb[6].mxu0  ;;  %v2157_v13 = vsel %vm211_vm2, %v38_v11, 0 }
  0xe8   :  { %v160_v16 = vpop.f32.mrb[7].mxu0  ;;  %1823 = vmatpush3.bf16.msra.mxu0 %v2157_v13 }
  0xe9   :  { %v213_v17 = vsel %vm211_vm2, %v189_v14, 0  ;;  %v315_v46 = vpack.c.bf16 %v160_v16, %v160_v16  ;;  %1834 = vmatprep.subr.bf16.mxu0 %v2031_v6  ;;  %v530_v14 = vpack.c.bf16 %v2100_v7, %v2100_v7 }
  0xea   :  { %1799 = vmatpush3.bf16.msra.mxu1 %v213_v17 }
  0xeb   :  { %1804 = vmatprep.subr.bf16.mxu1 %v2031_v6  ;;  %v337_v49 = vsel %vm211_vm2, %v315_v46, 0 }
  0xed   :  { %v2133_v32 = vpop.f32.mrb[8].mxu0 }
  0xee   :  { %v173_v38 = vpop.f32.mrb[9].mxu0  ;;  %v532_v7 = vpack.c.bf16 %v2133_v32, %v2133_v32 }
  0xef   :  { %v2136_v39 = vpop.f32.mrb[10].mxu0  ;;  %v190_v41 = vpack.c.bf16 %v173_v38, %v173_v38 }
  0xf0   :  { %v176_v40 = vpop.f32.mrb[11].mxu0 }
  0xf1   :  { %v271_v42 = vsel %vm207_vm3, %v190_v41, 0  ;;  %v316_v50 = vpack.c.bf16 %v176_v40, %v176_v40 }
  0xf3   :  { %v395_v52 = vsel %vm207_vm3, %v316_v50, 0 }
 0x147   :  { %v199_v18 = vpop.trf.xlu0 }
 0x148   :  { %1801 = vmatmul.mubr.msk.bf16.vlgmr.msra.gmra.mrb[0].mxu1 %vm207_vm3, %v199_v18  ;;  %v37_v18 = vld [vmem:[%s2372_s2] sm:$0xf] }
 0x149   :  { %1806 = vmatprep.mubr.msk.bf16.mxu1 %vm2032_vm1, %v2031_v6  ;;  %1805 = vmatpush3.bf16.xpose.msra.mxu1 %v271_v42  ;;  %v2167_v23 = vsel %vm211_vm2, %v37_v18, 0 }
 0x14a   :  { %1810 = vmatprep.subr.bf16.mxu1 %v2031_v6 }
 0x21b   :  { %v249_v26 = vpop.f32.mrb[0].mxu1 }
 0x21c   :  { %v250_v27 = vadd.f32 %v249_v26, %v2129_v25  ;;  %v1802_v28 = vpop.f32.mrb[1].mxu1  ;;  %v611_v26 = vsel %vm207_vm3, %v532_v7, 0 }
 0x21d   :  { %v252_v29 = vpop.f32.mrb[2].mxu1 }
 0x21e   :  { %v1803_v30 = vpop.f32.mrb[3].mxu1  ;;  %v255_v31 = vsel %vm207_vm3, %v250_v27, -inf }
 0x21f   :  { %256 = vmax.xlane.f32.xlu0 %v255_v31 }
 0x2ac   :  { %v257_v33 = vpop.xlane.xlu0 %256 }
 0x2ad   :  { %v258_v34 = vsub.f32 %v250_v27, %v257_v33  ;;  %v531_v27 = vpack.c.bf16 %v2104_v12, %v2104_v12 }
 0x2af   :  { %v259_v35 = vmul.f32 1.442695, %v258_v34  ;;  %v553_v32 = vsel %vm211_vm2, %v531_v27, 0 }
 0x2b1   :  { %1975 = vpow2.f32 %v259_v35 }
 0x2bb   :  { %v1976_v36 = vpop.eup %1975 }
 0x2bc   :  { %v261_v37 = vsel %vm207_vm3, %v1976_v36, 0.0 }
 0x2bd   :  { %262 = vadd.xlane.f32.xlu1 %v261_v37 }
 0x2ea   :  { %317 = vxpose.xlu1.c.b16.start.end [1/1] (short) (narrow) %v314_v43, 16 }
 0x34a   :  { %v263_v44 = vpop.xlane.xlu1 %262 }
 0x34b   :  { %1977 = vrcp.f32 %v263_v44 }
 0x350   :  { %v325_v51 = vpop.trf.xlu1 }
 0x355   :  { %v1978_v45 = vpop.eup %1977 }
 0x356   :  { %v265_v47 = vmul.f32 %v1978_v45, %v1976_v36 }
 0x358   :  { %v266_v48 = vpack.c.bf16 %v265_v47, %v265_v47 }
 0x35a   :  { %1807 = vmatmul.mubr.msk.bf16.vlgmr.msra.gmra.mrb[4].mxu1 %vm207_vm3, %v266_v48 }
 0x35b   :  { %1811 = vmatpush3.bf16.msra.mxu1 %v337_v49  ;;  %1812 = vmatprep.mubr.msk.bf16.mxu1 %vm2032_vm1, %v2031_v6 }
 0x35c   :  { %1816 = vmatprep.subr.bf16.mxu1 %v2031_v6 }
 0x362   :  { %1813 = vmatmul.mubr.msk.bf16.vlgmr.msra.gmra.mrb[8].mxu1 %vm207_vm3, %v325_v51 }
 0x363   :  { %1818 = vmatprep.mubr.msk.bf16.mxu1 %vm2032_vm1, %v2031_v6 }
 0x364   :  { %1817 = vmatpush3.bf16.xpose.msra.mxu1 %v395_v52 }
 0x365   :  { %1828 = vmatprep.subr.bf16.mxu1 %v2031_v6 }
 0x42d   :  { %v307_v53 = vpop.f32.mrb[4].mxu1 }
 0x42e   :  { %v1808_v54 = vpop.f32.mrb[5].mxu1  ;;  %v313_v24 = vpack.c.bf16 %v307_v53, %v307_v53 }
 0x42f   :  { %v310_v55 = vpop.f32.mrb[6].mxu1 }
 0x430   :  { %v1809_v56 = vpop.f32.mrb[7].mxu1  ;;  %v39_v55 = vld [vmem:[%s2372_s2 + $0x8] sm:$0xf] }
 0x431   :  { %v2200_v56 = vsel %vm211_vm2, %v39_v55, 0 }
 0x435   :  { %v373_v57 = vpop.f32.mrb[8].mxu1 }
 0x436   :  { %v374_v58 = vadd.f32 %v373_v57, %v2129_v25  ;;  %v1814_v59 = vpop.f32.mrb[9].mxu1  ;;  %v701_v57 = vpack.c.bf16 %v2102_v9, %v2102_v9 }
 0x437   :  { %v376_v60 = vpop.f32.mrb[10].mxu1 }
 0x438   :  { %v1815_v61 = vpop.f32.mrb[11].mxu1  ;;  %v379_v62 = vsel %vm207_vm3, %v374_v58, -inf  ;;  %v702_v60 = vpack.c.bf16 %v2106_v15, %v2106_v15  ;;  %v703_v15 = vpack.c.bf16 %v2136_v39, %v2136_v39 }
 0x439   :  { %380 = vmax.xlane.f32.xlu0 %v379_v62 }
 0x43a   :  { %v782_v11 = vsel %vm207_vm3, %v703_v15, 0 }
 0x4c6   :  { %v381_v63 = vpop.xlane.xlu0 %380 }
 0x4c7   :  { %v382_v0 = vsub.f32 %v374_v58, %v381_v63  ;;  %v724_v63 = vsel %vm211_vm2, %v702_v60, 0 }
 0x4c9   :  { %v383_v1 = vmul.f32 1.442695, %v382_v0 }
 0x4cb   :  { %1979 = vpow2.f32 %v383_v1 }
 0x4d5   :  { %v1980_v8 = vpop.eup %1979 }
 0x4d6   :  { %v385_v10 = vsel %vm207_vm3, %v1980_v8, 0.0 }
 0x4d7   :  { %386 = vadd.xlane.f32.xlu0 %v385_v10 }
 0x504   :  { %533 = vxpose.xlu0.c.b16.start.end [1/1] (short) (narrow) %v530_v14, 16 }
 0x564   :  { %v387_v16 = vpop.xlane.xlu0 %386 }
 0x565   :  { %1981 = vrcp.f32 %v387_v16 }
 0x56a   :  { %v541_v35 = vpop.trf.xlu0 }
 0x56f   :  { %v1982_v17 = vpop.eup %1981 }
 0x570   :  { %v389_v21 = vmul.f32 %v1982_v17, %v1980_v8 }
 0x572   :  { %v390_v22 = vpack.c.bf16 %v389_v21, %v389_v21 }
 0x574   :  { %1819 = vmatmul.mubr.msk.bf16.vlgmr.msra.gmra.mrb[12].mxu1 %vm207_vm3, %v390_v22 }
 0x575   :  { %1829 = vmatpush3.bf16.msra.mxu1 %v2167_v23  ;;  %1830 = vmatprep.mubr.msk.bf16.mxu1 %vm2032_vm1, %v2031_v6 }
 0x576   :  { %1840 = vmatprep.subr.bf16.mxu1 %v2031_v6 }
 0x57c   :  { %1831 = vmatmul.mubr.msk.bf16.vlgmr.msra.gmra.mrb[16].mxu1 %vm207_vm3, %v313_v24 }
 0x57d   :  { %1842 = vmatprep.mubr.msk.bf16.mxu1 %vm2032_vm1, %v2031_v6 }
 0x57e   :  { %1841 = vmatpush3.bf16.xpose.msra.mxu1 %v611_v26 }
 0x57f   :  { %1852 = vmatprep.subr.bf16.mxu1 %v2031_v6 }
 0x647   :  { %v431_v28 = vpop.f32.mrb[12].mxu1 }
 0x648   :  { %v437_v29 = vpack.c.bf16 %v431_v28, %v431_v28  ;;  %v1820_v30 = vpop.f32.mrb[13].mxu1 }
 0x649   :  { %v434_v31 = vpop.f32.mrb[14].mxu1 }
 0x64a   :  { %v1821_v33 = vpop.f32.mrb[15].mxu1  ;;  %1825 = vmatmul.mubr.msk.bf16.vlgmr.msra.gmra.mrb[12].mxu0 %vm207_vm3, %v437_v29  ;;  %v1973_v29 = vld [vmem:[%s2370_s0 + $0x10] sm:$0xff]  }
 0x64b   :  { %1835 = vmatpush3.bf16.msra.mxu0 %v553_v32  ;;  %1836 = vmatprep.mubr.msk.bf16.mxu0 %vm2032_vm1, %v2031_v6 }
 0x64c   :  { %1846 = vmatprep.subr.bf16.mxu0 %v2031_v6 }
 0x64f   :  { %v524_v34 = vpop.f32.mrb[16].mxu1 }
 0x650   :  { %v1832_v36 = vpop.f32.mrb[17].mxu1 }
 0x651   :  { %v527_v37 = vpop.f32.mrb[18].mxu1 }
 0x652   :  { %v1833_v12 = vpop.f32.mrb[19].mxu1  ;;  %1837 = vmatmul.mubr.msk.bf16.vlgmr.msra.gmra.mrb[16].mxu0 %vm207_vm3, %v541_v35 }
 0x653   :  { %1848 = vmatprep.mubr.msk.bf16.mxu0 %vm2032_vm1, %v2031_v6  ;;  %1847 = vmatpush3.bf16.msra.mxu0 %v2200_v56 }
 0x654   :  { %1858 = vmatprep.subr.bf16.mxu0 %v2031_v6 }
 0x71d   :  { %v478_v38 = vpop.f32.mrb[12].mxu0 }
 0x71e   :  { %v2191_v40 = vadd.f32 %v524_v34, %v478_v38  ;;  %v1826_v41 = vpop.f32.mrb[13].mxu0  ;;  %v1974_v38 = vld [vmem:[%s2370_s0 + $0x18] sm:$0xff]  }
 0x71f   :  { %v481_v42 = vpop.f32.mrb[14].mxu0 }
 0x720   :  { %v1827_v43 = vpop.f32.mrb[15].mxu0 }
 0x725   :  { %v589_v44 = vpop.f32.mrb[16].mxu0 }
 0x726   :  { %v590_v45 = vadd.f32 %v589_v44, %v2129_v25  ;;  %v1838_v46 = vpop.f32.mrb[17].mxu0 }
 0x727   :  { %v592_v47 = vpop.f32.mrb[18].mxu0 }
 0x728   :  { %v1839_v48 = vpop.f32.mrb[19].mxu0  ;;  %v595_v49 = vsel %vm207_vm3, %v590_v45, -inf }
 0x729   :  { %596 = vmax.xlane.f32.xlu1 %v595_v49 }
 0x7b6   :  { %v597_v50 = vpop.xlane.xlu1 %596 }
 0x7b7   :  { %v598_v51 = vsub.f32 %v590_v45, %v597_v50 }
 0x7b9   :  { %v599_v52 = vmul.f32 1.442695, %v598_v51 }
 0x7bb   :  { %1983 = vpow2.f32 %v599_v52 }
 0x7c5   :  { %v1984_v53 = vpop.eup %1983 }
 0x7c6   :  { %v601_v54 = vsel %vm207_vm3, %v1984_v53, 0.0 }
 0x7c7   :  { %602 = vadd.xlane.f32.xlu1 %v601_v54 }
 0x7f4   :  { %704 = vxpose.xlu1.c.b16.start.end [1/1] (short) (narrow) %v701_v57, 16 }
 0x854   :  { %v603_v58 = vpop.xlane.xlu1 %602 }
 0x855   :  { %1985 = vrcp.f32 %v603_v58 }
 0x85a   :  { %v712_v9 = vpop.trf.xlu1 }
 0x85f   :  { %v1986_v59 = vpop.eup %1985 }
 0x860   :  { %v605_v61 = vmul.f32 %v1986_v59, %v1984_v53  ;;  %v2275_v53 = vld [vmem:[%s2373_s3] ss:$0 sm:$0xff]  ;;  %s2034_s3 = smov [#allocation2]  }
 0x861   :  { %s1656_s16 = sshll.u32 %s2034_s3, 4  ;;  %s1657_s16 = int_to_ptr.vmem [resolvable:$true] %s1656_s16 }
 0x862   :  { %v606_v62 = vpack.c.bf16 %v605_v61, %v605_v61  ;;  %s2007_s17 = scalar_lea.vmem %s1657_s16, 256  ;;  %p2012_p1 = scmp.lt.s32.totalorder %s1657_s16, %s1657_s16 }
 0x863   :  { %p2008_p0 = scmp.ne.s32.totalorder %s1657_s16, %s2007_s17  ;;  %p2013_p2 = scmp.lt.s32.totalorder %s2007_s17, %s2007_s17 }
 0x864   :  { %1843 = vmatmul.mubr.msk.bf16.vlgmr.msra.gmra.mrb[20].mxu1 %vm207_vm3, %v606_v62 }
 0x865   :  { %1853 = vmatpush3.bf16.msra.mxu1 %v724_v63  ;;  %1854 = vmatprep.mubr.msk.bf16.mxu1 %vm2032_vm1, %v2031_v6  ;;  %p2014_p3 = por %p2013_p2, %p2012_p1 }
 0x866   :  { %1864 = vmatprep.subr.bf16.mxu1 %v2031_v6 }
 0x867   :  { %p2015_p4 = pnand %p2014_p3, %p2008_p0 }
 0x86c   :  { %1855 = vmatmul.mubr.msk.bf16.vlgmr.msra.gmra.mrb[24].mxu1 %vm207_vm3, %v712_v9 }
 0x86d   :  { %1866 = vmatprep.mubr.msk.bf16.mxu1 %vm2032_vm1, %v2031_v6 }
 0x937   :  { %v647_v0 = vpop.f32.mrb[20].mxu1 }
 0x938   :  { %v653_v1 = vpack.c.bf16 %v647_v0, %v647_v0  ;;  %v1844_v8 = vpop.f32.mrb[21].mxu1 }
 0x939   :  { %v650_v10 = vpop.f32.mrb[22].mxu1 }
 0x93a   :  { %v1845_v14 = vpop.f32.mrb[23].mxu1  ;;  %1849 = vmatmul.mubr.msk.bf16.vlgmr.msra.gmra.mrb[20].mxu0 %vm207_vm3, %v653_v1 }
 0x93b   :  { %1859 = vmatpush3.bf16.xpose.msra.mxu0 %v782_v11  ;;  %1860 = vmatprep.mubr.msk.bf16.mxu0 %vm2032_vm1, %v2031_v6 }
 0x93c   :  { %1870 = vmatprep.subr.bf16.mxu0 %v1973_v29 }
 0x93f   :  { %v760_v16 = vpop.f32.mrb[24].mxu1 }
 0x940   :  { %v761_v17 = vadd.f32 %v760_v16, %v2129_v25  ;;  %v1856_v18 = vpop.f32.mrb[25].mxu1 }
 0x941   :  { %v763_v21 = vpop.f32.mrb[26].mxu1 }
 0x942   :  { %v1857_v22 = vpop.f32.mrb[27].mxu1  ;;  %v766_v39 = vsel %vm207_vm3, %v761_v17, -inf }
 0x943   :  { %767 = vmax.xlane.f32.xlu0 %v766_v39 }
 0x9d0   :  { %v768_v7 = vpop.xlane.xlu0 %767 }
 0x9d1   :  { %v769_v24 = vsub.f32 %v761_v17, %v768_v7 }
 0x9d3   :  { %v770_v26 = vmul.f32 1.442695, %v769_v24 }
 0x9d5   :  { %1987 = vpow2.f32 %v770_v26 }
 0x9df   :  { %v1988_v27 = vpop.eup %1987 }
 0x9e0   :  { %v772_v28 = vsel %vm207_vm3, %v1988_v27, 0.0 }
 0x9e1   :  { %773 = vadd.xlane.f32.xlu0 %v772_v28 }
 0xa0d   :  { %v694_v30 = vpop.f32.mrb[20].mxu0 }
 0xa0e   :  { %v700_v31 = vadd.f32 %v694_v30, %v2191_v40  ;;  %v1850_v32 = vpop.f32.mrb[21].mxu0 }
 0xa0f   :  { %v697_v33 = vpop.f32.mrb[22].mxu0 }
 0xa10   :  { %v1851_v34 = vpop.f32.mrb[23].mxu0 }
 0xa6e   :  { %v774_v35 = vpop.xlane.xlu0 %773 }
 0xa6f   :  { %1989 = vrcp.f32 %v774_v35 }
 0xa79   :  { %v1990_v36 = vpop.eup %1989 }
 0xa7a   :  { %v776_v37 = vmul.f32 %v1990_v36, %v1988_v27 }
 0xa7c   :  { %v777_v12 = vpack.c.bf16 %v776_v37, %v776_v37 }
 0xa7e   :  { %1861 = vmatmul.mubr.msk.bf16.vlgmr.msra.gmra.mrb[24].mxu0 %vm207_vm3, %v777_v12 }
 0xa7f   :  { %1871 = vmatpush3.bf16.msra.mxu0 %v1973_v29  ;;  %1874 = vmatprep.mubr.msk.bf16.mxu0 %vm88_vm0, %v2071_v2  ;;  %v40_v2 = vld [vmem:[%s2372_s2 + $0xc] sm:$0xf] }
 0xa80   :  { %1872 = vmatprep.subr.bf16.mxu0 %v1974_v38 }
 0xa83   :  { %1873 = vmatpush3.bf16.msra.mxu0 %v1974_v38 }
 0xa84   :  { %1904 = vmatprep.subr.bf16.mxu0 %v2031_v6 }
 0xa86   :  { %1875 = vmatmul.mubr.msk.bf16.vlgmr.msra.gmra.mrb[28].mxu0 %vm88_vm0, %v2078_v3  ;;  %v2252_v3 = vsel %vm211_vm2, %v40_v2, 0 }
 0xa87   :  { %1878 = vmatprep.mubr.msk.bf16.mxu0 %vm88_vm0, %v2083_v4  ;;  %1865 = vmatpush3.bf16.msra.mxu1 %v2252_v3 }
 0xa88   :  { %1886 = vmatprep.subr.bf16.mxu1 %v2031_v6 }
 0xa8e   :  { %1879 = vmatmul.mubr.msk.bf16.gmra.mrb[32].mxu0 %vm88_vm0, %v2092_v5 }
 0xa8f   :  { %1882 = vmatprep.mubr.msk.bf16.mxu0 %vm88_vm0, %v2116_v19 }
 0xa96   :  { %1883 = vmatmul.mubr.msk.bf16.gmra.mrb[36].mxu0 %vm88_vm0, %v2121_v20 }
 0xa97   :  { %1906 = vmatprep.mubr.msk.bf16.mxu0 %vm2032_vm1, %v2031_v6 }
 0xb51   :  { %v818_v4 = vpop.f32.mrb[24].mxu0 }
 0xb52   :  { %v824_v5 = vpack.c.bf16 %v818_v4, %v818_v4  ;;  %v1862_v19 = vpop.f32.mrb[25].mxu0 }
 0xb53   :  { %v821_v40 = vpop.f32.mrb[26].mxu0 }
 0xb54   :  { %v1863_v41 = vpop.f32.mrb[27].mxu0  ;;  %1867 = vmatmul.mubr.msk.bf16.vlgmr.msra.gmra.mrb[28].mxu1 %vm207_vm3, %v824_v5 }
 0xb55   :  { %1888 = vmatprep.mubr.msk.bf16.mxu1 %vm2032_vm1, %v2031_v6 }
 0xb59   :  { %v2259_v20 = vpop.f32.mrb[28].mxu0 }
 0xb5a   :  { %v931_v42 = vpop.f32.mrb[29].mxu0 }
 0xb5b   :  { %v978_v43 = vpack.c.bf16 %v931_v42, %v931_v42  ;;  %v2261_v44 = vpop.f32.mrb[30].mxu0 }
 0xb5c   :  { %v934_v45 = vpop.f32.mrb[31].mxu0 }
 0xb5d   :  { %981 = vxpose.xlu0.c.b16.start.end [1/1] (short) (narrow) %v978_v43, 16  ;;  %v1102_v26 = vpack.c.bf16 %v934_v45, %v934_v45  ;;  %v1312_v45 = vpack.c.bf16 %v2259_v20, %v2259_v20 }
 0xb61   :  { %v2263_v46 = vpop.f32.mrb[32].mxu0 }
 0xb62   :  { %v947_v47 = vpop.f32.mrb[33].mxu0 }
 0xb63   :  { %v979_v48 = vpack.c.bf16 %v947_v47, %v947_v47  ;;  %v2265_v49 = vpop.f32.mrb[34].mxu0 }
 0xb64   :  { %v950_v50 = vpop.f32.mrb[35].mxu0 }
 0xb65   :  { %v1001_v51 = vsel %vm211_vm2, %v979_v48, 0  ;;  %v1103_v29 = vpack.c.bf16 %v950_v50, %v950_v50 }
 0xb66   :  { %1887 = vmatpush3.bf16.msra.mxu1 %v1001_v51 }
 0xb67   :  { %1892 = vmatprep.subr.bf16.mxu1 %v2031_v6  ;;  %v1125_v32 = vsel %vm211_vm2, %v1103_v29, 0 }
 0xb69   :  { %v2281_v1 = vpop.f32.mrb[36].mxu0 }
 0xb6a   :  { %v963_v17 = vpop.f32.mrb[37].mxu0 }
 0xb6b   :  { %v2284_v18 = vpop.f32.mrb[38].mxu0  ;;  %v980_v22 = vpack.c.bf16 %v963_v17, %v963_v17 }
 0xb6c   :  { %v966_v21 = vpop.f32.mrb[39].mxu0 }
 0xb6d   :  { %v1104_v39 = vpack.c.bf16 %v966_v21, %v966_v21  ;;  %v1059_v7 = vsel %vm207_vm3, %v980_v22, 0 }
 0xb6f   :  { %v1183_v24 = vsel %vm207_vm3, %v1104_v39, 0 }
 0xb70   :  { %1905 = vmatpush3.bf16.xpose.msra.mxu0 %v1183_v24 }
 0xb71   :  { %1916 = vmatprep.subr.bf16.mxu0 %v2031_v6 }
 0xbc3   :  { %v989_v52 = vpop.trf.xlu0 }
 0xbc4   :  { %1889 = vmatmul.mubr.msk.bf16.vlgmr.msra.gmra.mrb[32].mxu1 %vm207_vm3, %v989_v52  ;;  %v1314_v52 = vpack.c.bf16 %v2281_v1, %v2281_v1 }
 0xbc5   :  { %1894 = vmatprep.mubr.msk.bf16.mxu1 %vm2032_vm1, %v2031_v6  ;;  %1893 = vmatpush3.bf16.xpose.msra.mxu1 %v1059_v7 }
 0xbc6   :  { %1898 = vmatprep.subr.bf16.mxu1 %v2031_v6  ;;  %v1393_v20 = vsel %vm207_vm3, %v1314_v52, 0 }
 0xc27   :  { %v865_v54 = vpop.f32.mrb[28].mxu1 }
 0xc28   :  { %v871_v55 = vadd.f32 %v865_v54, %v700_v31  ;;  %v1868_v57 = vpop.f32.mrb[29].mxu1 }
 0xc29   :  { %v868_v58 = vpop.f32.mrb[30].mxu1 }
 0xc2a   :  { %v878_v59 = vadd.f32 %v2275_v53, %v871_v55  ;;  %v1869_v60 = vpop.f32.mrb[31].mxu1 }
 0xc2c   :  { %879 = vst.msk [vmem:[#allocation2] sm:$0xff] %vm88_vm0, %v878_v59 }
 0xc97   :  { %v1037_v61 = vpop.f32.mrb[32].mxu1 }
 0xc98   :  { %v1038_v62 = vadd.f32 %v1037_v61, %v2129_v25  ;;  %v1890_v63 = vpop.f32.mrb[33].mxu1 }
 0xc99   :  { %v1040_v9 = vpop.f32.mrb[34].mxu1 }
 0xc9a   :  { %v1891_v15 = vpop.f32.mrb[35].mxu1  ;;  %v1043_v0 = vsel %vm207_vm3, %v1038_v62, -inf }
 0xc9b   :  { %1044 = vmax.xlane.f32.xlu1 %v1043_v0 }
 0xd28   :  { %v1045_v8 = vpop.xlane.xlu1 %1044 }
 0xd29   :  { %v1046_v10 = vsub.f32 %v1038_v62, %v1045_v8 }
 0xd2b   :  { %v1047_v11 = vmul.f32 1.442695, %v1046_v10 }
 0xd2d   :  { %1991 = vpow2.f32 %v1047_v11 }
 0xd37   :  { %v1992_v14 = vpop.eup %1991 }
 0xd38   :  { %v1049_v16 = vsel %vm207_vm3, %v1992_v14, 0.0 }
 0xd39   :  { %1050 = vadd.xlane.f32.xlu1 %v1049_v16 }
 0xd66   :  { %1105 = vxpose.xlu1.c.b16.start.end [1/1] (short) (narrow) %v1102_v26, 16 }
 0xdc6   :  { %v1051_v27 = vpop.xlane.xlu1 %1050 }
 0xdc7   :  { %1993 = vrcp.f32 %v1051_v27 }
 0xdcc   :  { %v1113_v33 = vpop.trf.xlu1 }
 0xdd1   :  { %v1994_v28 = vpop.eup %1993 }
 0xdd2   :  { %v1053_v30 = vmul.f32 %v1994_v28, %v1992_v14  ;;  %v1480_v28 = vpack.c.bf16 %v2261_v44, %v2261_v44 }
 0xdd4   :  { %v1054_v31 = vpack.c.bf16 %v1053_v30, %v1053_v30 }
 0xdd6   :  { %1895 = vmatmul.mubr.msk.bf16.vlgmr.msra.gmra.mrb[36].mxu1 %vm207_vm3, %v1054_v31  ;;  %v1481_v31 = vpack.c.bf16 %v2265_v49, %v2265_v49  ;;  %v1482_v49 = vpack.c.bf16 %v2284_v18, %v2284_v18 }
 0xdd7   :  { %1899 = vmatpush3.bf16.msra.mxu1 %v1125_v32  ;;  %1900 = vmatprep.mubr.msk.bf16.mxu1 %vm2032_vm1, %v2031_v6 }
 0xdd8   :  { %1910 = vmatprep.subr.bf16.mxu1 %v2031_v6 }
 0xdde   :  { %1901 = vmatmul.mubr.msk.bf16.vlgmr.msra.gmra.mrb[40].mxu1 %vm207_vm3, %v1113_v33 }
 0xddf   :  { %1911 = vmatpush3.bf16.msra.mxu1 %v2157_v13  ;;  %1912 = vmatprep.mubr.msk.bf16.mxu1 %vm2032_vm1, %v2031_v6 }
 0xde0   :  { %1922 = vmatprep.subr.bf16.mxu1 %v2031_v6 }
 0xea9   :  { %v1095_v34 = vpop.f32.mrb[36].mxu1 }
 0xeaa   :  { %v1896_v35 = vpop.f32.mrb[37].mxu1  ;;  %v1101_v54 = vpack.c.bf16 %v1095_v34, %v1095_v34  ;;  %v1503_v34 = vsel %vm211_vm2, %v1481_v31, 0 }
 0xeab   :  { %v1098_v36 = vpop.f32.mrb[38].mxu1 }
 0xeac   :  { %v1897_v37 = vpop.f32.mrb[39].mxu1 }
 0xeb1   :  { %v1161_v12 = vpop.f32.mrb[40].mxu1 }
 0xeb2   :  { %v1162_v38 = vadd.f32 %v1161_v12, %v2129_v25  ;;  %v1902_v2 = vpop.f32.mrb[41].mxu1 }
 0xeb3   :  { %v1164_v4 = vpop.f32.mrb[42].mxu1 }
 0xeb4   :  { %v1903_v5 = vpop.f32.mrb[43].mxu1  ;;  %v1167_v19 = vsel %vm207_vm3, %v1162_v38, -inf }
 0xeb5   :  { %1168 = vmax.xlane.f32.xlu0 %v1167_v19 }
 0xf42   :  { %v1169_v40 = vpop.xlane.xlu0 %1168 }
 0xf43   :  { %v1170_v13 = vsub.f32 %v1162_v38, %v1169_v40  ;;  %v1561_v38 = vsel %vm207_vm3, %v1482_v49, 0 }
 0xf45   :  { %v1171_v41 = vmul.f32 1.442695, %v1170_v13 }
 0xf47   :  { %1995 = vpow2.f32 %v1171_v41 }
 0xf51   :  { %v1996_v42 = vpop.eup %1995 }
 0xf52   :  { %v1173_v43 = vsel %vm207_vm3, %v1996_v42, 0.0 }
 0xf53   :  { %1174 = vadd.xlane.f32.xlu0 %v1173_v43 }
 0xf80   :  { %1315 = vxpose.xlu0.c.b16.start.end [1/1] (short) (narrow) %v1312_v45, 16 }
 0xfe0   :  { %v1175_v47 = vpop.xlane.xlu0 %1174 }
 0xfe1   :  { %1997 = vrcp.f32 %v1175_v47 }
 0xfe6   :  { %v1323_v63 = vpop.trf.xlu0 }
 0xfeb   :  { %v1998_v48 = vpop.eup %1997 }
 0xfec   :  { %v1177_v50 = vmul.f32 %v1998_v48, %v1996_v42 }
 0xfee   :  { %v1178_v51 = vpack.c.bf16 %v1177_v50, %v1177_v50 }
 0xff0   :  { %1907 = vmatmul.mubr.msk.bf16.vlgmr.msra.gmra.mrb[40].mxu0 %vm207_vm3, %v1178_v51 }
 0xff1   :  { %1917 = vmatpush3.bf16.msra.mxu0 %v2167_v23  ;;  %1918 = vmatprep.mubr.msk.bf16.mxu0 %vm2032_vm1, %v2031_v6  ;;  %v1313_v23 = vpack.c.bf16 %v2263_v46, %v2263_v46 }
 0xff2   :  { %1928 = vmatprep.subr.bf16.mxu0 %v2031_v6 }
 0xff3   :  { %v1335_v60 = vsel %vm211_vm2, %v1313_v23, 0 }
 0xff8   :  { %1919 = vmatmul.mubr.msk.bf16.vlgmr.msra.gmra.mrb[44].mxu0 %vm207_vm3, %v1101_v54 }
 0xff9   :  { %1930 = vmatprep.mubr.msk.bf16.mxu0 %vm2032_vm1, %v2031_v6 }
 0xffa   :  { %1929 = vmatpush3.bf16.xpose.msra.mxu0 %v1393_v20 }
 0xffb   :  { %1940 = vmatprep.subr.bf16.mxu0 %v2031_v6 }
0x10c3   :  { %v1219_v55 = vpop.f32.mrb[40].mxu0 }
0x10c4   :  { %v1225_v57 = vpack.c.bf16 %v1219_v55, %v1219_v55  ;;  %v1908_v58 = vpop.f32.mrb[41].mxu0 }
0x10c5   :  { %v1222_v59 = vpop.f32.mrb[42].mxu0 }
0x10c6   :  { %v1909_v61 = vpop.f32.mrb[43].mxu0  ;;  %1913 = vmatmul.mubr.msk.bf16.vlgmr.msra.gmra.mrb[44].mxu1 %vm207_vm3, %v1225_v57 }
0x10c7   :  { %1923 = vmatpush3.bf16.msra.mxu1 %v1335_v60  ;;  %1924 = vmatprep.mubr.msk.bf16.mxu1 %vm2032_vm1, %v2031_v6 }
0x10c8   :  { %1934 = vmatprep.subr.bf16.mxu1 %v2031_v6 }
0x10cb   :  { %v1306_v62 = vpop.f32.mrb[44].mxu0 }
0x10cc   :  { %v1920_v9 = vpop.f32.mrb[45].mxu0 }
0x10cd   :  { %v1309_v15 = vpop.f32.mrb[46].mxu0 }
0x10ce   :  { %v1921_v46 = vpop.f32.mrb[47].mxu0  ;;  %1925 = vmatmul.mubr.msk.bf16.vlgmr.msra.gmra.mrb[48].mxu1 %vm207_vm3, %v1323_v63 }
0x10cf   :  { %1935 = vmatpush3.bf16.msra.mxu1 %v2200_v56  ;;  %1936 = vmatprep.mubr.msk.bf16.mxu1 %vm2032_vm1, %v2031_v6 }
0x10d0   :  { %1946 = vmatprep.subr.bf16.mxu1 %v2031_v6 }
0x1199   :  { %v1263_v0 = vpop.f32.mrb[44].mxu1 }
0x119a   :  { %v1307_v1 = vadd.f32 %v1306_v62, %v1263_v0  ;;  %v1914_v8 = vpop.f32.mrb[45].mxu1 }
0x119b   :  { %v1266_v10 = vpop.f32.mrb[46].mxu1 }
0x119c   :  { %v1915_v11 = vpop.f32.mrb[47].mxu1 }
0x11a1   :  { %v1371_v14 = vpop.f32.mrb[48].mxu1 }
0x11a2   :  { %v1372_v16 = vadd.f32 %v1371_v14, %v2129_v25  ;;  %v1926_v17 = vpop.f32.mrb[49].mxu1 }
0x11a3   :  { %v1374_v21 = vpop.f32.mrb[50].mxu1 }
0x11a4   :  { %v1927_v22 = vpop.f32.mrb[51].mxu1  ;;  %v1377_v39 = vsel %vm207_vm3, %v1372_v16, -inf }
0x11a5   :  { %1378 = vmax.xlane.f32.xlu1 %v1377_v39 }
0x1232   :  { %v1379_v56 = vpop.xlane.xlu1 %1378 }
0x1233   :  { %v1380_v7 = vsub.f32 %v1372_v16, %v1379_v56 }
0x1235   :  { %v1381_v24 = vmul.f32 1.442695, %v1380_v7 }
0x1237   :  { %1999 = vpow2.f32 %v1381_v24 }
0x1241   :  { %v2000_v26 = vpop.eup %1999 }
0x1242   :  { %v1383_v27 = vsel %vm207_vm3, %v2000_v26, 0.0 }
0x1243   :  { %1384 = vadd.xlane.f32.xlu1 %v1383_v27 }
0x1270   :  { %1483 = vxpose.xlu1.c.b16.start.end [1/1] (short) (narrow) %v1480_v28, 16 }
0x12d0   :  { %v1385_v29 = vpop.xlane.xlu1 %1384 }
0x12d1   :  { %2001 = vrcp.f32 %v1385_v29 }
0x12d6   :  { %v1491_v44 = vpop.trf.xlu1 }
0x12db   :  { %v2002_v30 = vpop.eup %2001 }
0x12dc   :  { %v1387_v32 = vmul.f32 %v2002_v30, %v2000_v26 }
0x12de   :  { %v1388_v33 = vpack.c.bf16 %v1387_v32, %v1387_v32 }
0x12e0   :  { %1931 = vmatmul.mubr.msk.bf16.vlgmr.msra.gmra.mrb[48].mxu0 %vm207_vm3, %v1388_v33 }
0x12e1   :  { %1941 = vmatpush3.bf16.msra.mxu0 %v1503_v34  ;;  %1942 = vmatprep.mubr.msk.bf16.mxu0 %vm2032_vm1, %v2031_v6 }
0x12e2   :  { %1952 = vmatprep.subr.bf16.mxu0 %v2031_v6 }
0x12e8   :  { %1943 = vmatmul.mubr.msk.bf16.vlgmr.msra.gmra.mrb[52].mxu0 %vm207_vm3, %v1491_v44 }
0x12e9   :  { %1953 = vmatpush3.bf16.msra.mxu0 %v2252_v3  ;;  %1954 = vmatprep.mubr.msk.bf16.mxu0 %vm2032_vm1, %v2031_v6 }
0x13b3   :  { %v1429_v35 = vpop.f32.mrb[48].mxu0 }
0x13b4   :  { %v1435_v36 = vpack.c.bf16 %v1429_v35, %v1429_v35  ;;  %v1932_v37 = vpop.f32.mrb[49].mxu0 }
0x13b5   :  { %v1432_v12 = vpop.f32.mrb[50].mxu0 }
0x13b6   :  { %v1933_v2 = vpop.f32.mrb[51].mxu0  ;;  %1937 = vmatmul.mubr.msk.bf16.vlgmr.msra.gmra.mrb[52].mxu1 %vm207_vm3, %v1435_v36 }
0x13b7   :  { %1947 = vmatpush3.bf16.xpose.msra.mxu1 %v1561_v38  ;;  %1948 = vmatprep.mubr.msk.bf16.mxu1 %vm2032_vm1, %v2031_v6 }
0x13bb   :  { %v1539_v3 = vpop.f32.mrb[52].mxu0 }
0x13bc   :  { %v1540_v4 = vadd.f32 %v1539_v3, %v2129_v25  ;;  %v1944_v5 = vpop.f32.mrb[53].mxu0 }
0x13bd   :  { %v1542_v19 = vpop.f32.mrb[54].mxu0 }
0x13be   :  { %v1945_v40 = vpop.f32.mrb[55].mxu0  ;;  %v1545_v18 = vsel %vm207_vm3, %v1540_v4, -inf }
0x13bf   :  { %1546 = vmax.xlane.f32.xlu0 %v1545_v18 }
0x144c   :  { %v1547_v13 = vpop.xlane.xlu0 %1546 }
0x144d   :  { %v1548_v41 = vsub.f32 %v1540_v4, %v1547_v13 }
0x144f   :  { %v1549_v42 = vmul.f32 1.442695, %v1548_v41 }
0x1451   :  { %2003 = vpow2.f32 %v1549_v42 }
0x145b   :  { %v2004_v43 = vpop.eup %2003 }
0x145c   :  { %v1551_v45 = vsel %vm207_vm3, %v2004_v43, 0.0 }
0x145d   :  { %1552 = vadd.xlane.f32.xlu0 %v1551_v45 }
0x1489   :  { %v1473_v47 = vpop.f32.mrb[52].mxu1 }
0x148a   :  { %v1479_v48 = vadd.f32 %v1473_v47, %v1307_v1  ;;  %v1938_v6 = vpop.f32.mrb[53].mxu1 }
0x148b   :  { %v1476_v50 = vpop.f32.mrb[54].mxu1 }
0x148c   :  { %v1939_v51 = vpop.f32.mrb[55].mxu1 }
0x14ea   :  { %v1553_v25 = vpop.xlane.xlu0 %1552 }
0x14eb   :  { %2005 = vrcp.f32 %v1553_v25 }
0x14f5   :  { %v2006_v52 = vpop.eup %2005 }
0x14f6   :  { %v1555_v54 = vmul.f32 %v2006_v52, %v2004_v43 }
0x14f8   :  { %v1556_v20 = vpack.c.bf16 %v1555_v54, %v1555_v54 }
0x14fa   :  { %1949 = vmatmul.mubr.msk.bf16.vlgmr.msra.gmra.mrb[56].mxu1 %vm207_vm3, %v1556_v20 }
0x15cd   :  { %v1597_v23 = vpop.f32.mrb[56].mxu1 }
0x15ce   :  { %v1603_v55 = vpack.c.bf16 %v1597_v23, %v1597_v23  ;;  %v1950_v57 = vpop.f32.mrb[57].mxu1 }
0x15cf   :  { %v1600_v58 = vpop.f32.mrb[58].mxu1 }
0x15d0   :  { %v1951_v59 = vpop.f32.mrb[59].mxu1  ;;  %1955 = vmatmul.mubr.msk.bf16.vlgmr.msra.gmra.mrb[56].mxu0 %vm207_vm3, %v1603_v55 }
0x16a3   :  { %v1641_v60 = vpop.f32.mrb[56].mxu0 }
0x16a4   :  { %v1647_v61 = vadd.f32 %v1641_v60, %v1479_v48  ;;  %v1956_v62 = vpop.f32.mrb[57].mxu0 }
0x16a5   :  { %v1644_v63 = vpop.f32.mrb[58].mxu0 }
0x16a6   :  { %v1648_v9 = vadd.f32 %v2275_v53, %v1647_v61  ;;  %v1957_v15 = vpop.f32.mrb[59].mxu0 }
0x16a8   :  { %1650 = vst.msk [vmem:[#allocation2 + $0x8] sm:$0xff] %vm88_vm0, %v1648_v9 }
0x16a9   :  { %2018 = shalt.err (!%p2015_p4)
}
0x16aa   :  { %s2019_s20 = scalar_lea.hbm %s2374_s4, 256 }
0x16ab   :  { %p2020_p5 = scmp.ne.s32.totalorder %s2374_s4, %s2019_s20  ;;  %p2023_p6 = scmp.lt.u32.totalorder %s2019_s20, %s2374_s4 }
0x16ad   :  { %p2025_p7 = pnand %p2023_p6, %p2020_p5 }
0x16af   :  { %2028 = shalt.err (!%p2025_p7)
}
0x16b0   :  { %s2035_s25 = smov 128   ;;  %s2036_s26 = smov 8  }
0x16b1   :  { %1662 = dma.vmem_to_hbm [thread:$0]  %s1657_s16, 256, %s2374_s4, [#allocation3], %s2035_s25, %s2035_s25, %s2036_s26  }
0x16b2   :  { %2029 = dma.done.wait [#allocation3], 256  }
0x16b3   :  { %2030 = vsyncadd [#allocation3], 4294967040 }
0x16b4   :  { %1666 = vsyncpa [#allocation3], 1 }

</bundles_post_ra>
